<compile_context>
chip_gen: v6e
topology: v6e:2x2x1
jax: 0.10.0
libtpu: 0.0.40
codegen_flags: <defaults>
</compile_context>

<pallas_src>
import jax
import jax.numpy as jnp
from jax import lax
from jax.experimental import pallas as pl
from jax.experimental.pallas import tpu as pltpu

_CHUNK = 32  # timesteps per prefix-scan chunk (must be a power of two, multiple of 8)


def _lds_kernel(x_ref, h0_ref, apow_ref, b_ref, w_ref, out_ref,
                work_ref, hcarry_ref, xtail_ref):
    # x_ref    : (T_TILE, G*Din)          one batch-group x T-tile (batch dim squeezed)
    # h0_ref   : (1, G*S)                 apow_ref : (CHUNK, G*S), row j = A^(j+1)
    # b_ref    : (G*Din, G*S)  block-diag w_ref    : (G*S + kx*G*Din, G*Dout) = [C ; M]
    # out_ref  : (T_TILE, G*Dout)
    # work_ref : VMEM (T_TILE, G*S + kx*G*Din)  -- [ub -> h | lag-shifted x]
    # hcarry_ref: VMEM (1, G*S)           xtail_ref: VMEM (max(kx-1,1), G*Din)
    T_TILE, GDin = x_ref.shape
    GS = h0_ref.shape[1]
    CHUNK = apow_ref.shape[0]
    kx = (work_ref.shape[1] - GS) // GDin
    pad = kx - 1
    t_idx = pl.program_id(1)

    # ---- (re)initialise carries at the first T tile of every batch group ----
    @pl.when(t_idx == 0)
    def _():
        hcarry_ref[...] = h0_ref[...]
        xtail_ref[...] = jnp.zeros_like(xtail_ref)

    x = x_ref[...].astype(jnp.float32)                       # (T_TILE, G*Din)

    # ---- input drive u_t @ B for the whole tile -> first GS work columns ----
    work_ref[:, 0:GS] = jnp.dot(x, b_ref[...], preferred_element_type=jnp.float32)

    # ---- causal AR taps: lag-k shifted x written straight into the work scratch ----
    if pad > 0:
        xtail = xtail_ref[...]                               # last kx-1 rows of prev tile
    for k in range(kx):
        col0 = GS + k * GDin
        if k > 0:
            work_ref[0:k, col0:col0 + GDin] = xtail[pad - k:pad, :]
        work_ref[k:T_TILE, col0:col0 + GDin] = x[0:T_TILE - k, :]
    if pad > 0:
        xtail_ref[...] = x[T_TILE - pad:T_TILE, :]           # carry for the next tile

    # ---- hoisted scan constants (built once, reused by every chunk) ----
    apow = apow_ref[...]                                     # (CHUNK, GS)
    shifts = []
    s = 1
    while s < CHUNK:
        shifts.append(s)
        s *= 2
    row = lax.broadcasted_iota(jnp.int32, (CHUNK, GS), 0)
    masks = [row >= s for s in shifts]
    a_lvls = [jnp.broadcast_to(apow[s - 1:s, :], (CHUNK, GS)) for s in shifts]
    w_mat = w_ref[...]
    n_chunks = T_TILE // CHUNK

    # ---- blocked recurrence + interleaved fused output matmul ----
    def body(c, h_prev):                                     # h_prev: (1, GS)
        base = pl.multiple_of(c * CHUNK, CHUNK)
        v = work_ref[pl.ds(base, CHUNK), pl.ds(0, GS)]       # ub rows of this chunk
        # Hillis-Steele prefix scan over the chunk's time rows (XLU roll + masked add)
        for s_, m_, a_ in zip(shifts, masks, a_lvls):
            v = v + a_ * jnp.where(m_, pltpu.roll(v, shift=s_, axis=0), 0.0)
        h_rows = apow * h_prev + v                           # h_{base+j} = A^{j+1} h_prev + ...
        # overwrite the (now dead) ub rows -> work row block becomes [h | x_shift]
        work_ref[pl.ds(base, CHUNK), pl.ds(0, GS)] = h_rows
        blk = work_ref[pl.ds(base, CHUNK), :]                # (CHUNK, GS + kx*GDin)
        out_ref[pl.ds(base, CHUNK), :] = jnp.dot(
            blk, w_mat, preferred_element_type=jnp.float32).astype(out_ref.dtype)
        return h_rows[CHUNK - 1:CHUNK, :]

    h_last = lax.fori_loop(0, n_chunks, body, hcarry_ref[...], unroll=True)
    hcarry_ref[...] = h_last                                 # carry across T tiles


def lds_forward(x, h0, A, B, C, M, *, chunk=_CHUNK, t_tile=None):
    """Pallas LDS forward.  x: (bsz, T, Din) -> (bsz, T, Dout)."""
    bsz, T, Din = x.shape
    S = A.shape[0]
    Dout = C.shape[1]
    kx = M.shape[2]

    # ---- batch lane-packing factor ----
    G = max(1, 128 // S) if S <= 128 else 1
    G = min(G, bsz)
    n_groups = -(-bsz // G)
    bsz_pad = n_groups * G

    # ---- T padding / tiling ----
    T_padc = -(-T // chunk) * chunk
    if t_tile is None:
        t_tile = T_padc if T_padc <= 1024 else 512
    t_tile = max(chunk, -(-t_tile // chunk) * chunk)
    t_tile = max(t_tile, -(-kx // chunk) * chunk)            # AR tail must fit in one tile
    n_tt = -(-T_padc // t_tile)
    T_pad = n_tt * t_tile

    GDin, GS, GDout = G * Din, G * S, G * Dout
    Kw = GS + kx * GDin

    # ---- pack activations: (bsz, T, Din) -> (n_groups, T_pad, G*Din), lane-dense ----
    xf = x
    if bsz_pad != bsz:
        xf = jnp.pad(xf, ((0, bsz_pad - bsz), (0, 0), (0, 0)))
    if T_pad != T:
        xf = jnp.pad(xf, ((0, 0), (0, T_pad - T), (0, 0)))
    x_pk = xf.reshape(n_groups, G, T_pad, Din)
    x_pk = jnp.transpose(x_pk, (0, 2, 1, 3)).reshape(n_groups, T_pad, GDin)

    # ---- pack parameters ----
    Af = A.astype(jnp.float32).reshape(1, S)
    A_pk = jnp.tile(Af, (1, G))                              # (1, G*S)
    h0_pk = jnp.tile(h0.astype(jnp.float32).reshape(1, S), (1, G))
    apow_pk = jnp.cumprod(jnp.broadcast_to(A_pk, (chunk, GS)), axis=0)  # row j = A^(j+1)

    Bf = B.astype(jnp.float32)
    B_bd = jnp.zeros((GDin, GS), jnp.float32)                # block-diagonal B
    for g in range(G):
        B_bd = B_bd.at[g * Din:(g + 1) * Din, g * S:(g + 1) * S].set(Bf)

    Cf = C.astype(jnp.float32)
    Mf = M.astype(jnp.float32)
    W = jnp.zeros((Kw, GDout), jnp.float32)                  # fused [C ; M], block per g
    for g in range(G):
        W = W.at[g * S:(g + 1) * S, g * Dout:(g + 1) * Dout].set(Cf)
        for k in range(kx):
            r0 = GS + k * GDin + g * Din
            W = W.at[r0:r0 + Din, g * Dout:(g + 1) * Dout].set(Mf[:, :, k].T)

    # ---- explicit VMEM budget (2x double-buffered blocks + weights + scratches) ----
    work_w = GS + kx * GDin
    est = (2 * t_tile * GDin * x.dtype.itemsize
           + 2 * t_tile * GDout * 4
           + 2 * (GS + chunk * GS + GDin * GS + Kw * GDout) * 4
           + t_tile * work_w * 4
           + (GS + max(kx - 1, 1) * GDin) * 4
           + 2 * t_tile * max(GDin, work_w) * 4)             # in-kernel intermediates
    vmem_limit = int(min(max(est + (8 << 20), 16 << 20), 100 << 20))

    out = pl.pallas_call(
        _lds_kernel,
        out_shape=jax.ShapeDtypeStruct((n_groups, T_pad, GDout), jnp.float32),
        grid_spec=pltpu.PrefetchScalarGridSpec(
            num_scalar_prefetch=0,
            grid=(n_groups, n_tt),
            in_specs=[
                pl.BlockSpec((None, t_tile, GDin), lambda b, t: (b, t, 0)),   # x packed
                pl.BlockSpec((1, GS), lambda b, t: (0, 0)),                   # h0
                pl.BlockSpec((chunk, GS), lambda b, t: (0, 0)),               # A powers
                pl.BlockSpec((GDin, GS), lambda b, t: (0, 0)),                # B block-diag
                pl.BlockSpec((Kw, GDout), lambda b, t: (0, 0)),               # fused [C;M]
            ],
            out_specs=pl.BlockSpec((None, t_tile, GDout), lambda b, t: (b, t, 0)),
            scratch_shapes=[
                pltpu.VMEM((t_tile, work_w), jnp.float32),        # merged ub/h + x_shift
                pltpu.VMEM((1, GS), jnp.float32),                 # h carry across T tiles
                pltpu.VMEM((max(kx - 1, 1), GDin), jnp.float32),  # x tail carry
            ],
        ),
        compiler_params=pltpu.CompilerParams(
            dimension_semantics=("parallel", "arbitrary"),
            vmem_limit_bytes=vmem_limit),
    )(x_pk, h0_pk, apow_pk, B_bd, W)

    # ---- unpack: (n_groups, T_pad, G*Dout) -> (bsz, T, Dout) ----
    out = out.reshape(n_groups, T_pad, G, Dout)
    out = jnp.transpose(out, (0, 2, 1, 3)).reshape(bsz_pad, T_pad, Dout)
    return out[:bsz, :T, :]


def lds_ref(x, h0, A, B, C, M):
    """Pure-JAX reference mirroring the PyTorch forward."""
    xf = x.astype(jnp.float32)
    bsz, T, _ = x.shape
    Dout, _, kx = M.shape
    u = jnp.einsum('btd,ds->bts', xf, B.astype(jnp.float32))
    Af = A.astype(jnp.float32)

    def step(h, u_t):
        h = Af * h + u_t
        return h, h

    h0b = jnp.broadcast_to(h0.astype(jnp.float32), (bsz, A.shape[0]))
    _, hs = lax.scan(step, h0b, jnp.swapaxes(u, 0, 1))
    H = jnp.swapaxes(hs, 0, 1)                               # (bsz, T, S)
    lds_out = H @ C.astype(jnp.float32)
    ar = jnp.zeros((bsz, T, Dout), jnp.float32)
    for k in range(kx):
        if k >= T:
            continue
        contrib = jnp.einsum('bti,oi->bto', xf[:, :T - k, :], M[:, :, k].astype(jnp.float32))
        ar = ar.at[:, k:, :].add(contrib)
    return lds_out + ar


if __name__ == "__main__":
    bsz, seq_len, input_dim = 2, 8, 4
    state_dim, output_dim, kx, lam = 32, 4, 10, 5

    key = jax.random.PRNGKey(0)
    k_h0, k_a, k_b, k_c, k_m, k_x = jax.random.split(key, 6)

    h0 = jax.random.normal(k_h0, (state_dim,), dtype=jnp.float32)
    # TODO(synk): exponential_decay_init is not defined in the source module;
    # use deterministic decay factors exp(-lam * U(0,1)) as a stand-in.
    A = jnp.exp(-lam * jax.random.uniform(k_a, (state_dim,), dtype=jnp.float32))
    B = jax.random.normal(k_b, (input_dim, state_dim), dtype=jnp.float32) / input_dim
    C = jax.random.normal(k_c, (state_dim, output_dim), dtype=jnp.float32) / state_dim
    M = jax.random.normal(k_m, (output_dim, input_dim, kx), dtype=jnp.float32) / input_dim
    x = jax.random.normal(k_x, (bsz, seq_len, input_dim), dtype=jnp.float32)

    out = jax.block_until_ready(lds_forward(x, h0, A, B, C, M))
    ref = lds_ref(x, h0, A, B, C, M)
    assert out.shape == (bsz, seq_len, output_dim)
    assert jnp.allclose(out, ref, atol=1e-4, rtol=1e-4), float(jnp.max(jnp.abs(out - ref)))

    # secondary check: exercises multi-chunk scan, multi-T-tile carries, batch padding.
    bsz2, T2 = 5, 150
    x2 = jax.random.normal(jax.random.PRNGKey(1), (bsz2, T2, input_dim), dtype=jnp.float32)
    out2 = jax.block_until_ready(lds_forward(x2, h0, A, B, C, M, t_tile=64))
    ref2 = lds_ref(x2, h0, A, B, C, M)
    assert out2.shape == (bsz2, T2, output_dim)
    assert jnp.allclose(out2, ref2, atol=1e-3, rtol=1e-3), float(jnp.max(jnp.abs(out2 - ref2)))

    print("KERNEL_OK")
</pallas_src>

<mosaic_0001>
module attributes {stable_mosaic.version = 11 : i64} {
  func.func @_lds_kernel(%arg0: i32, %arg1: i32, %arg2: memref<1x32x8xf32, #tpu.memory_space<vmem>>, %arg3: memref<1x64xf32, #tpu.memory_space<vmem>>, %arg4: memref<32x64xf32, #tpu.memory_space<vmem>>, %arg5: memref<8x64xf32, #tpu.memory_space<vmem>>, %arg6: memref<144x8xf32, #tpu.memory_space<vmem>>, %arg7: memref<1x32x8xf32, #tpu.memory_space<vmem>>, %arg8: memref<32x144xf32, #tpu.memory_space<vmem>>, %arg9: memref<1x64xf32, #tpu.memory_space<vmem>>, %arg10: memref<9x8xf32, #tpu.memory_space<vmem>>) attributes {dimension_semantics = [#tpu.dimension_semantics<parallel>, #tpu.dimension_semantics<arbitrary>], iteration_bounds = array<i64: 1, 1>, scalar_prefetch = 0 : i64, scratch_operands = 3 : i64, tpu.core_type = #tpu.core_type<tc>, window_params = [{transform_indices = @transform_0, window_bounds = array<i64: 1, 32, 8>}, {pipeline_mode = #tpu.pipeline_mode<synchronous>, transform_indices = @transform_1, window_bounds = array<i64: 1, 64>}, {pipeline_mode = #tpu.pipeline_mode<synchronous>, transform_indices = @transform_2, window_bounds = array<i64: 32, 64>}, {pipeline_mode = #tpu.pipeline_mode<synchronous>, transform_indices = @transform_3, window_bounds = array<i64: 8, 64>}, {pipeline_mode = #tpu.pipeline_mode<synchronous>, transform_indices = @transform_4, window_bounds = array<i64: 144, 8>}, {transform_indices = @transform_5, window_bounds = array<i64: 1, 32, 8>}]} {
    %c0_i32 = arith.constant 0 : i32
    %0 = arith.cmpi eq, %arg1, %c0_i32 : i32
    %1 = arith.extui %0 : i1 to i32
    %c0_i32_0 = arith.constant 0 : i32
    %2 = arith.cmpi ne, %1, %c0_i32_0 : i32
    scf.if %2 {
      %c0_56 = arith.constant 0 : index
      %c0_57 = arith.constant 0 : index
      %119 = vector.load %arg3[%c0_56, %c0_57] : memref<1x64xf32, #tpu.memory_space<vmem>>, vector<1x64xf32>
      %c0_58 = arith.constant 0 : index
      %c0_59 = arith.constant 0 : index
      %120 = vector.load %arg9[%c0_58, %c0_59] : memref<1x64xf32, #tpu.memory_space<vmem>>, vector<1x64xf32>
      tpu.vector_store %arg9[%c0_58, %c0_59], %119 {strides = array<i32>} : memref<1x64xf32, #tpu.memory_space<vmem>>, vector<1x64xf32>,
      %cst_60 = arith.constant 0.000000e+00 : f32
      %121 = vector.broadcast %cst_60 : f32 to vector<9x8xf32>
      %c0_61 = arith.constant 0 : index
      %c0_62 = arith.constant 0 : index
      %122 = vector.load %arg10[%c0_61, %c0_62] : memref<9x8xf32, #tpu.memory_space<vmem>>, vector<9x8xf32>
      tpu.vector_store %arg10[%c0_61, %c0_62], %121 {strides = array<i32>} : memref<9x8xf32, #tpu.memory_space<vmem>>, vector<9x8xf32>,
    } else {
    }
    %c0 = arith.constant 0 : index
    %c0_1 = arith.constant 0 : index
    %c0_2 = arith.constant 0 : index
    %3 = vector.load %arg2[%c0, %c0_1, %c0_2] : memref<1x32x8xf32, #tpu.memory_space<vmem>>, vector<1x32x8xf32>
    %4 = vector.shape_cast %3 : vector<1x32x8xf32> to vector<32x8xf32>
    %c0_3 = arith.constant 0 : index
    %c0_4 = arith.constant 0 : index
    %5 = vector.load %arg5[%c0_3, %c0_4] : memref<8x64xf32, #tpu.memory_space<vmem>>, vector<8x64xf32>
    %cst = arith.constant dense<0.000000e+00> : vector<32x64xf32>
    %6 = tpu.matmul %4, %5, %cst {dimension_numbers = #tpu.dot_dimension_numbers<[1], [0], [0], [1], [0, 0, 1, 1], [], []>} : vector<32x8xf32>, vector<8x64xf32>, vector<32x64xf32> -> vector<32x64xf32>
    %c0_5 = arith.constant 0 : index
    %c0_6 = arith.constant 0 : index
    %7 = vector.load %arg8[%c0_5, %c0_6] : memref<32x144xf32, #tpu.memory_space<vmem>>, vector<32x64xf32>
    tpu.vector_store %arg8[%c0_5, %c0_6], %6 {strides = array<i32>} : memref<32x144xf32, #tpu.memory_space<vmem>>, vector<32x64xf32>,
    %c0_7 = arith.constant 0 : index
    %c0_8 = arith.constant 0 : index
    %8 = vector.load %arg10[%c0_7, %c0_8] : memref<9x8xf32, #tpu.memory_space<vmem>>, vector<9x8xf32>
    %c0_9 = arith.constant 0 : index
    %c64 = arith.constant 64 : index
    %9 = vector.load %arg8[%c0_9, %c64] : memref<32x144xf32, #tpu.memory_space<vmem>>, vector<32x8xf32>
    tpu.vector_store %arg8[%c0_9, %c64], %4 {strides = array<i32>} : memref<32x144xf32, #tpu.memory_space<vmem>>, vector<32x8xf32>,
    %10 = vector.extract_strided_slice %8 {offsets = [8, 0], sizes = [1, 8], strides = [1, 1]} : vector<9x8xf32> to vector<1x8xf32>
    %c0_10 = arith.constant 0 : index
    %c72 = arith.constant 72 : index
    %11 = vector.load %arg8[%c0_10, %c72] : memref<32x144xf32, #tpu.memory_space<vmem>>, vector<1x8xf32>
    tpu.vector_store %arg8[%c0_10, %c72], %10 {strides = array<i32>} : memref<32x144xf32, #tpu.memory_space<vmem>>, vector<1x8xf32>,
    %12 = vector.extract_strided_slice %4 {offsets = [0, 0], sizes = [31, 8], strides = [1, 1]} : vector<32x8xf32> to vector<31x8xf32>
    %c1 = arith.constant 1 : index
    %c72_11 = arith.constant 72 : index
    %13 = vector.load %arg8[%c1, %c72_11] : memref<32x144xf32, #tpu.memory_space<vmem>>, vector<31x8xf32>
    tpu.vector_store %arg8[%c1, %c72_11], %12 {strides = array<i32>} : memref<32x144xf32, #tpu.memory_space<vmem>>, vector<31x8xf32>,
    %14 = vector.extract_strided_slice %8 {offsets = [7, 0], sizes = [2, 8], strides = [1, 1]} : vector<9x8xf32> to vector<2x8xf32>
    %c0_12 = arith.constant 0 : index
    %c80 = arith.constant 80 : index
    %15 = vector.load %arg8[%c0_12, %c80] : memref<32x144xf32, #tpu.memory_space<vmem>>, vector<2x8xf32>
    tpu.vector_store %arg8[%c0_12, %c80], %14 {strides = array<i32>} : memref<32x144xf32, #tpu.memory_space<vmem>>, vector<2x8xf32>,
    %16 = vector.extract_strided_slice %4 {offsets = [0, 0], sizes = [30, 8], strides = [1, 1]} : vector<32x8xf32> to vector<30x8xf32>
    %c2 = arith.constant 2 : index
    %c80_13 = arith.constant 80 : index
    %17 = vector.load %arg8[%c2, %c80_13] : memref<32x144xf32, #tpu.memory_space<vmem>>, vector<30x8xf32>
    tpu.vector_store %arg8[%c2, %c80_13], %16 {strides = array<i32>} : memref<32x144xf32, #tpu.memory_space<vmem>>, vector<30x8xf32>,
    %18 = vector.extract_strided_slice %8 {offsets = [6, 0], sizes = [3, 8], strides = [1, 1]} : vector<9x8xf32> to vector<3x8xf32>
    %c0_14 = arith.constant 0 : index
    %c88 = arith.constant 88 : index
    %19 = vector.load %arg8[%c0_14, %c88] : memref<32x144xf32, #tpu.memory_space<vmem>>, vector<3x8xf32>
    tpu.vector_store %arg8[%c0_14, %c88], %18 {strides = array<i32>} : memref<32x144xf32, #tpu.memory_space<vmem>>, vector<3x8xf32>,
    %20 = vector.extract_strided_slice %4 {offsets = [0, 0], sizes = [29, 8], strides = [1, 1]} : vector<32x8xf32> to vector<29x8xf32>
    %c3 = arith.constant 3 : index
    %c88_15 = arith.constant 88 : index
    %21 = vector.load %arg8[%c3, %c88_15] : memref<32x144xf32, #tpu.memory_space<vmem>>, vector<29x8xf32>
    tpu.vector_store %arg8[%c3, %c88_15], %20 {strides = array<i32>} : memref<32x144xf32, #tpu.memory_space<vmem>>, vector<29x8xf32>,
    %22 = vector.extract_strided_slice %8 {offsets = [5, 0], sizes = [4, 8], strides = [1, 1]} : vector<9x8xf32> to vector<4x8xf32>
    %c0_16 = arith.constant 0 : index
    %c96 = arith.constant 96 : index
    %23 = vector.load %arg8[%c0_16, %c96] : memref<32x144xf32, #tpu.memory_space<vmem>>, vector<4x8xf32>
    tpu.vector_store %arg8[%c0_16, %c96], %22 {strides = array<i32>} : memref<32x144xf32, #tpu.memory_space<vmem>>, vector<4x8xf32>,
    %24 = vector.extract_strided_slice %4 {offsets = [0, 0], sizes = [28, 8], strides = [1, 1]} : vector<32x8xf32> to vector<28x8xf32>
    %c4 = arith.constant 4 : index
    %c96_17 = arith.constant 96 : index
    %25 = vector.load %arg8[%c4, %c96_17] : memref<32x144xf32, #tpu.memory_space<vmem>>, vector<28x8xf32>
    tpu.vector_store %arg8[%c4, %c96_17], %24 {strides = array<i32>} : memref<32x144xf32, #tpu.memory_space<vmem>>, vector<28x8xf32>,
    %26 = vector.extract_strided_slice %8 {offsets = [4, 0], sizes = [5, 8], strides = [1, 1]} : vector<9x8xf32> to vector<5x8xf32>
    %c0_18 = arith.constant 0 : index
    %c104 = arith.constant 104 : index
    %27 = vector.load %arg8[%c0_18, %c104] : memref<32x144xf32, #tpu.memory_space<vmem>>, vector<5x8xf32>
    tpu.vector_store %arg8[%c0_18, %c104], %26 {strides = array<i32>} : memref<32x144xf32, #tpu.memory_space<vmem>>, vector<5x8xf32>,
    %28 = vector.extract_strided_slice %4 {offsets = [0, 0], sizes = [27, 8], strides = [1, 1]} : vector<32x8xf32> to vector<27x8xf32>
    %c5 = arith.constant 5 : index
    %c104_19 = arith.constant 104 : index
    %29 = vector.load %arg8[%c5, %c104_19] : memref<32x144xf32, #tpu.memory_space<vmem>>, vector<27x8xf32>
    tpu.vector_store %arg8[%c5, %c104_19], %28 {strides = array<i32>} : memref<32x144xf32, #tpu.memory_space<vmem>>, vector<27x8xf32>,
    %30 = vector.extract_strided_slice %8 {offsets = [3, 0], sizes = [6, 8], strides = [1, 1]} : vector<9x8xf32> to vector<6x8xf32>
    %c0_20 = arith.constant 0 : index
    %c112 = arith.constant 112 : index
    %31 = vector.load %arg8[%c0_20, %c112] : memref<32x144xf32, #tpu.memory_space<vmem>>, vector<6x8xf32>
    tpu.vector_store %arg8[%c0_20, %c112], %30 {strides = array<i32>} : memref<32x144xf32, #tpu.memory_space<vmem>>, vector<6x8xf32>,
    %32 = vector.extract_strided_slice %4 {offsets = [0, 0], sizes = [26, 8], strides = [1, 1]} : vector<32x8xf32> to vector<26x8xf32>
    %c6 = arith.constant 6 : index
    %c112_21 = arith.constant 112 : index
    %33 = vector.load %arg8[%c6, %c112_21] : memref<32x144xf32, #tpu.memory_space<vmem>>, vector<26x8xf32>
    tpu.vector_store %arg8[%c6, %c112_21], %32 {strides = array<i32>} : memref<32x144xf32, #tpu.memory_space<vmem>>, vector<26x8xf32>,
    %34 = vector.extract_strided_slice %8 {offsets = [2, 0], sizes = [7, 8], strides = [1, 1]} : vector<9x8xf32> to vector<7x8xf32>
    %c0_22 = arith.constant 0 : index
    %c120 = arith.constant 120 : index
    %35 = vector.load %arg8[%c0_22, %c120] : memref<32x144xf32, #tpu.memory_space<vmem>>, vector<7x8xf32>
    tpu.vector_store %arg8[%c0_22, %c120], %34 {strides = array<i32>} : memref<32x144xf32, #tpu.memory_space<vmem>>, vector<7x8xf32>,
    %36 = vector.extract_strided_slice %4 {offsets = [0, 0], sizes = [25, 8], strides = [1, 1]} : vector<32x8xf32> to vector<25x8xf32>
    %c7 = arith.constant 7 : index
    %c120_23 = arith.constant 120 : index
    %37 = vector.load %arg8[%c7, %c120_23] : memref<32x144xf32, #tpu.memory_space<vmem>>, vector<25x8xf32>
    tpu.vector_store %arg8[%c7, %c120_23], %36 {strides = array<i32>} : memref<32x144xf32, #tpu.memory_space<vmem>>, vector<25x8xf32>,
    %38 = vector.extract_strided_slice %8 {offsets = [1, 0], sizes = [8, 8], strides = [1, 1]} : vector<9x8xf32> to vector<8x8xf32>
    %c0_24 = arith.constant 0 : index
    %c128 = arith.constant 128 : index
    %39 = vector.load %arg8[%c0_24, %c128] : memref<32x144xf32, #tpu.memory_space<vmem>>, vector<8x8xf32>
    tpu.vector_store %arg8[%c0_24, %c128], %38 {strides = array<i32>} : memref<32x144xf32, #tpu.memory_space<vmem>>, vector<8x8xf32>,
    %40 = vector.extract_strided_slice %4 {offsets = [0, 0], sizes = [24, 8], strides = [1, 1]} : vector<32x8xf32> to vector<24x8xf32>
    %c8 = arith.constant 8 : index
    %c128_25 = arith.constant 128 : index
    %41 = vector.load %arg8[%c8, %c128_25] : memref<32x144xf32, #tpu.memory_space<vmem>>, vector<24x8xf32>
    tpu.vector_store %arg8[%c8, %c128_25], %40 {strides = array<i32>} : memref<32x144xf32, #tpu.memory_space<vmem>>, vector<24x8xf32>,
    %c0_26 = arith.constant 0 : index
    %c136 = arith.constant 136 : index
    %42 = vector.load %arg8[%c0_26, %c136] : memref<32x144xf32, #tpu.memory_space<vmem>>, vector<9x8xf32>
    tpu.vector_store %arg8[%c0_26, %c136], %8 {strides = array<i32>} : memref<32x144xf32, #tpu.memory_space<vmem>>, vector<9x8xf32>,
    %43 = vector.extract_strided_slice %4 {offsets = [0, 0], sizes = [23, 8], strides = [1, 1]} : vector<32x8xf32> to vector<23x8xf32>
    %c9 = arith.constant 9 : index
    %c136_27 = arith.constant 136 : index
    %44 = vector.load %arg8[%c9, %c136_27] : memref<32x144xf32, #tpu.memory_space<vmem>>, vector<23x8xf32>
    tpu.vector_store %arg8[%c9, %c136_27], %43 {strides = array<i32>} : memref<32x144xf32, #tpu.memory_space<vmem>>, vector<23x8xf32>,
    %45 = vector.extract_strided_slice %4 {offsets = [23, 0], sizes = [9, 8], strides = [1, 1]} : vector<32x8xf32> to vector<9x8xf32>
    %c0_28 = arith.constant 0 : index
    %c0_29 = arith.constant 0 : index
    %46 = vector.load %arg10[%c0_28, %c0_29] : memref<9x8xf32, #tpu.memory_space<vmem>>, vector<9x8xf32>
    tpu.vector_store %arg10[%c0_28, %c0_29], %45 {strides = array<i32>} : memref<9x8xf32, #tpu.memory_space<vmem>>, vector<9x8xf32>,
    %c0_30 = arith.constant 0 : index
    %c0_31 = arith.constant 0 : index
    %47 = vector.load %arg4[%c0_30, %c0_31] : memref<32x64xf32, #tpu.memory_space<vmem>>, vector<32x64xf32>
    %48 = tpu.iota {dimensions = array<i32: 0>} : vector<32x64xi32>
    %c1_i32 = arith.constant 1 : i32
    %49 = vector.broadcast %c1_i32 : i32 to vector<32x64xi32>
    %50 = arith.cmpi sge, %48, %49 : vector<32x64xi32>
    %c2_i32 = arith.constant 2 : i32
    %51 = vector.broadcast %c2_i32 : i32 to vector<32x64xi32>
    %52 = arith.cmpi sge, %48, %51 : vector<32x64xi32>
    %c4_i32 = arith.constant 4 : i32
    %53 = vector.broadcast %c4_i32 : i32 to vector<32x64xi32>
    %54 = arith.cmpi sge, %48, %53 : vector<32x64xi32>
    %c8_i32 = arith.constant 8 : i32
    %55 = vector.broadcast %c8_i32 : i32 to vector<32x64xi32>
    %56 = arith.cmpi sge, %48, %55 : vector<32x64xi32>
    %c16_i32 = arith.constant 16 : i32
    %57 = vector.broadcast %c16_i32 : i32 to vector<32x64xi32>
    %58 = arith.cmpi sge, %48, %57 : vector<32x64xi32>
    %59 = vector.extract_strided_slice %47 {offsets = [0, 0], sizes = [1, 64], strides = [1, 1]} : vector<32x64xf32> to vector<1x64xf32>
    %60 = vector.shape_cast %59 : vector<1x64xf32> to vector<1x64xf32>
    %61 = vector.broadcast %60 : vector<1x64xf32> to vector<32x64xf32>
    %62 = vector.extract_strided_slice %47 {offsets = [1, 0], sizes = [1, 64], strides = [1, 1]} : vector<32x64xf32> to vector<1x64xf32>
    %63 = vector.shape_cast %62 : vector<1x64xf32> to vector<1x64xf32>
    %64 = vector.broadcast %63 : vector<1x64xf32> to vector<32x64xf32>
    %65 = vector.extract_strided_slice %47 {offsets = [3, 0], sizes = [1, 64], strides = [1, 1]} : vector<32x64xf32> to vector<1x64xf32>
    %66 = vector.shape_cast %65 : vector<1x64xf32> to vector<1x64xf32>
    %67 = vector.broadcast %66 : vector<1x64xf32> to vector<32x64xf32>
    %68 = vector.extract_strided_slice %47 {offsets = [7, 0], sizes = [1, 64], strides = [1, 1]} : vector<32x64xf32> to vector<1x64xf32>
    %69 = vector.shape_cast %68 : vector<1x64xf32> to vector<1x64xf32>
    %70 = vector.broadcast %69 : vector<1x64xf32> to vector<32x64xf32>
    %71 = vector.extract_strided_slice %47 {offsets = [15, 0], sizes = [1, 64], strides = [1, 1]} : vector<32x64xf32> to vector<1x64xf32>
    %72 = vector.shape_cast %71 : vector<1x64xf32> to vector<1x64xf32>
    %73 = vector.broadcast %72 : vector<1x64xf32> to vector<32x64xf32>
    %c0_32 = arith.constant 0 : index
    %c0_33 = arith.constant 0 : index
    %74 = vector.load %arg6[%c0_32, %c0_33] : memref<144x8xf32, #tpu.memory_space<vmem>>, vector<144x8xf32>
    %c0_34 = arith.constant 0 : index
    %c0_35 = arith.constant 0 : index
    %75 = vector.load %arg9[%c0_34, %c0_35] : memref<1x64xf32, #tpu.memory_space<vmem>>, vector<1x64xf32>
    %c0_i32_36 = arith.constant 0 : i32
    %c32_i32 = arith.constant 32 : i32
    %76 = arith.muli %c0_i32_36, %c32_i32 : i32
    %77 = tpu.assume_multiple %76, 32 : i32
    %78 = arith.index_cast %77 : i32 to index
    %c0_37 = arith.constant 0 : index
    %79 = vector.load %arg8[%78, %c0_37] : memref<32x144xf32, #tpu.memory_space<vmem>>, vector<32x64xf32>
    %c1_i32_38 = arith.constant 1 : i32
    %80 = tpu.dynamic_rotate %79 by %c1_i32_38 dim 0 : vector<32x64xf32>, i32 -> vector<32x64xf32>
    %cst_39 = arith.constant 0.000000e+00 : f32
    %81 = vector.broadcast %cst_39 : f32 to vector<32x64xf32>
    %82 = arith.select %50, %80, %81 : vector<32x64xi1>, vector<32x64xf32>
    %83 = arith.mulf %61, %82 : vector<32x64xf32>
    %84 = arith.addf %79, %83 : vector<32x64xf32>
    %c2_i32_40 = arith.constant 2 : i32
    %85 = tpu.dynamic_rotate %84 by %c2_i32_40 dim 0 : vector<32x64xf32>, i32 -> vector<32x64xf32>
    %cst_41 = arith.constant 0.000000e+00 : f32
    %86 = vector.broadcast %cst_41 : f32 to vector<32x64xf32>
    %87 = arith.select %52, %85, %86 : vector<32x64xi1>, vector<32x64xf32>
    %88 = arith.mulf %64, %87 : vector<32x64xf32>
    %89 = arith.addf %84, %88 : vector<32x64xf32>
    %c4_i32_42 = arith.constant 4 : i32
    %90 = tpu.dynamic_rotate %89 by %c4_i32_42 dim 0 : vector<32x64xf32>, i32 -> vector<32x64xf32>
    %cst_43 = arith.constant 0.000000e+00 : f32
    %91 = vector.broadcast %cst_43 : f32 to vector<32x64xf32>
    %92 = arith.select %54, %90, %91 : vector<32x64xi1>, vector<32x64xf32>
    %93 = arith.mulf %67, %92 : vector<32x64xf32>
    %94 = arith.addf %89, %93 : vector<32x64xf32>
    %c8_i32_44 = arith.constant 8 : i32
    %95 = tpu.dynamic_rotate %94 by %c8_i32_44 dim 0 : vector<32x64xf32>, i32 -> vector<32x64xf32>
    %cst_45 = arith.constant 0.000000e+00 : f32
    %96 = vector.broadcast %cst_45 : f32 to vector<32x64xf32>
    %97 = arith.select %56, %95, %96 : vector<32x64xi1>, vector<32x64xf32>
    %98 = arith.mulf %70, %97 : vector<32x64xf32>
    %99 = arith.addf %94, %98 : vector<32x64xf32>
    %c16_i32_46 = arith.constant 16 : i32
    %100 = tpu.dynamic_rotate %99 by %c16_i32_46 dim 0 : vector<32x64xf32>, i32 -> vector<32x64xf32>
    %cst_47 = arith.constant 0.000000e+00 : f32
    %101 = vector.broadcast %cst_47 : f32 to vector<32x64xf32>
    %102 = arith.select %58, %100, %101 : vector<32x64xi1>, vector<32x64xf32>
    %103 = arith.mulf %73, %102 : vector<32x64xf32>
    %104 = arith.addf %99, %103 : vector<32x64xf32>
    %105 = vector.broadcast %75 : vector<1x64xf32> to vector<32x64xf32>
    %106 = arith.mulf %47, %105 : vector<32x64xf32>
    %107 = arith.addf %106, %104 : vector<32x64xf32>
    %108 = arith.index_cast %77 : i32 to index
    %c0_48 = arith.constant 0 : index
    %109 = vector.load %arg8[%108, %c0_48] : memref<32x144xf32, #tpu.memory_space<vmem>>, vector<32x64xf32>
    tpu.vector_store %arg8[%108, %c0_48], %107 {strides = array<i32>} : memref<32x144xf32, #tpu.memory_space<vmem>>, vector<32x64xf32>,
    %110 = arith.index_cast %77 : i32 to index
    %c0_49 = arith.constant 0 : index
    %111 = vector.load %arg8[%110, %c0_49] : memref<32x144xf32, #tpu.memory_space<vmem>>, vector<32x144xf32>
    %cst_50 = arith.constant dense<0.000000e+00> : vector<32x8xf32>
    %112 = tpu.matmul %111, %74, %cst_50 {dimension_numbers = #tpu.dot_dimension_numbers<[1], [0], [0], [1], [0, 0, 1, 1], [], []>} : vector<32x144xf32>, vector<144x8xf32>, vector<32x8xf32> -> vector<32x8xf32>
    %c0_51 = arith.constant 0 : index
    %113 = arith.index_cast %77 : i32 to index
    %c0_52 = arith.constant 0 : index
    %114 = vector.load %arg7[%c0_51, %113, %c0_52] : memref<1x32x8xf32, #tpu.memory_space<vmem>>, vector<1x32x8xf32>
    %115 = vector.shape_cast %114 : vector<1x32x8xf32> to vector<32x8xf32>
    %116 = vector.shape_cast %112 : vector<32x8xf32> to vector<1x32x8xf32>
    tpu.vector_store %arg7[%c0_51, %113, %c0_52], %116 {strides = array<i32>} : memref<1x32x8xf32, #tpu.memory_space<vmem>>, vector<1x32x8xf32>,
    %117 = vector.extract_strided_slice %107 {offsets = [31, 0], sizes = [1, 64], strides = [1, 1]} : vector<32x64xf32> to vector<1x64xf32>
    %c1_i32_53 = arith.constant 1 : i32
    %c0_54 = arith.constant 0 : index
    %c0_55 = arith.constant 0 : index
    %118 = vector.load %arg9[%c0_54, %c0_55] : memref<1x64xf32, #tpu.memory_space<vmem>>, vector<1x64xf32>
    tpu.vector_store %arg9[%c0_54, %c0_55], %117 {strides = array<i32>} : memref<1x64xf32, #tpu.memory_space<vmem>>, vector<1x64xf32>,
    return
  }
  func.func @transform_0(%arg0: i32, %arg1: i32) -> (i32, i32, i32) {
    %c0_i32 = arith.constant 0 : i32
    %c0_i32_0 = arith.constant 0 : i32
    return %arg0, %arg1, %c0_i32 : i32, i32, i32
  }
  func.func @transform_1(%arg0: i32, %arg1: i32) -> (i32, i32) {
    %c0_i32 = arith.constant 0 : i32
    %c0_i32_0 = arith.constant 0 : i32
    %c0_i32_1 = arith.constant 0 : i32
    return %c0_i32, %c0_i32_0 : i32, i32
  }
  func.func @transform_2(%arg0: i32, %arg1: i32) -> (i32, i32) {
    %c0_i32 = arith.constant 0 : i32
    %c0_i32_0 = arith.constant 0 : i32
    %c0_i32_1 = arith.constant 0 : i32
    return %c0_i32, %c0_i32_0 : i32, i32
  }
  func.func @transform_3(%arg0: i32, %arg1: i32) -> (i32, i32) {
    %c0_i32 = arith.constant 0 : i32
    %c0_i32_0 = arith.constant 0 : i32
    %c0_i32_1 = arith.constant 0 : i32
    return %c0_i32, %c0_i32_0 : i32, i32
  }
  func.func @transform_4(%arg0: i32, %arg1: i32) -> (i32, i32) {
    %c0_i32 = arith.constant 0 : i32
    %c0_i32_0 = arith.constant 0 : i32
    %c0_i32_1 = arith.constant 0 : i32
    return %c0_i32, %c0_i32_0 : i32, i32
  }
  func.func @transform_5(%arg0: i32, %arg1: i32) -> (i32, i32, i32) {
    %c0_i32 = arith.constant 0 : i32
    %c0_i32_0 = arith.constant 0 : i32
    return %arg0, %arg1, %c0_i32 : i32, i32, i32
  }
}

</mosaic_0001>

<bundles_post_ra>
// kernel: tpu_custom_call.1
= control target key start
LH: loop header
LB: loop body
LE: loop exit
PB: predicated region body
PF: predicated region fallthrough
CT: control target
= control target key end

     0   :  { %vm1288_vm0 = vcmask 64512   ;;  %vm29_vm1 = vcmask 57344   ;;  %v793_v3 = vmov 0.0   ;;  %vm164_vm2 = vcmask 1040384   ;;  %s794_s27 = smov 64   ;;  %s796_s28 = smov 80   ;;  %s1282_s3 = inlined_call_operand.vmem [shape: f32[8,64], index: 3, kind: input, shape index: {}]   ;;  %s1283_s0 = inlined_call_operand.vmem [shape: f32[1,32,8], index: 0, kind: input, shape index: {}]   ;;  %s1284_s1 = inlined_call_operand.vmem [shape: f32[1,64], index: 1, kind: input, shape index: {}]   ;;  %s1285_s4 = inlined_call_operand.vmem [shape: f32[144,8], index: 4, kind: input, shape index: {}]   ;;  %s1286_s2 = inlined_call_operand.vmem [shape: f32[32,64], index: 2, kind: input, shape index: {}]   ;;  %s1287_s5 = inlined_call_operand.vmem [shape: f32[1,32,8], index: 5, kind: output, shape index: {}]  }
   0x1   :  { %v35_v0 = vld [vmem:[%s1282_s3] sm:$0xff]  ;;  %v844_v2 = vld [vmem:[%s1283_s0 + $0x8] sm:$0xff]  ;;  %30 = vst.msk [vmem:[#allocation4 + $0x8] sm:$0x1] %vm29_vm1, %v793_v3  ;;  %747 = vmatprep.subr.mxu1 %v793_v3  ;;  %v859_v4 = vld [vmem:[%s1283_s0 + $0x10] sm:$0xff]  ;;  %vm426_vm3 = vcmask 64519  }
   0x2   :  { %v839_v1 = vld [vmem:[%s1283_s0] sm:$0xff]  ;;  %28 = vst.msk [vmem:[#allocation4] sm:$0xff] %vm1288_vm0, %v793_v3  ;;  %739 = vmatprep.subr.mxu0 %v35_v0  ;;  %401 = vst.msk [vmem:[#allocation2 + $0x28] sm:$0xff] %vm1288_vm0, %v844_v2  ;;  %v864_v5 = vld [vmem:[%s1283_s0 + $0x18] sm:$0xff]  ;;  %v168_v6 = vrot.slane %v859_v4, 7  ;;  %145 = vrot.lane.b32.xlu1 %v859_v4, %s794_s27  ;;  %s795_s0 = smov 72  }
   0x3   :  { %741 = vmatprep.mubr.msk.f32.mxu0 %vm1288_vm0, %v839_v1  ;;  %400 = vst.msk [vmem:[#allocation2 + $0x18] sm:$0xff] %vm1288_vm0, %v839_v1  ;;  %740 = vmatpush3.msra.mxu0 %v35_v0  ;;  %402 = vst.msk [vmem:[#allocation2 + $0x38] sm:$0xff] %vm1288_vm0, %v859_v4  ;;  %v170_v7 = vrot.slane %v864_v5, 7  ;;  %v880_v9 = vrot.slane %v839_v1, 7  ;;  %v166_v12 = vrot.slane %v844_v2, 7  ;;  %v203_v17 = vrot.slane %v859_v4, 6 }
   0x4   :  { %141 = vrot.lane.b32.xlu0 %v839_v1, %s794_s27  ;;  %742 = vmatmul.mubr.msk.f32.vlgmr.msra.gmra.mxu0 %vm1288_vm0, %v844_v2  ;;  %v205_v18 = vrot.slane %v864_v5, 6  ;;  %v200_v19 = vrot.slane %v839_v1, 6  ;;  %vm199_vm4 = vcmask 1041408   ;;  %v370_v20 = vrot.slane %v839_v1, 1  ;;  %s797_s29 = smov 88   ;;  %s798_s30 = smov 96  }
   0x5   :  { %744 = vmatprep.mubr.msk.f32.mxu0 %vm1288_vm0, %v859_v4  ;;  %v171_v8 = vsel %vm164_vm2, %v168_v6, %v170_v7  ;;  %630 = vmatprep.subr.mxu0 %v793_v3  ;;  %v900_v15 = vsel %vm164_vm2, %v166_v12, %v168_v6  ;;  %vm369_vm5 = vcmask 1046528   ;;  %v371_v21 = vrot.slane %v844_v2, 1  ;;  %s799_s6 = smov 104   ;;  %s800_s7 = smov 112  }
   0x6   :  { %178 = vrot.lane.b32.xlu1 %v171_v8, %s795_s0  ;;  %v373_v22 = vrot.slane %v859_v4, 1  ;;  %v375_v23 = vrot.slane %v864_v5, 1  ;;  %v201_v24 = vrot.slane %v844_v2, 6  ;;  %v206_v25 = vsel %vm199_vm4, %v203_v17, %v205_v18  ;;  %s801_s8 = smov 120   ;;  %s802_s9 = smov 8   ;;  %v490_v18 = vld [vmem:[%s1285_s4 + $0x60] sm:$0xff] }
   0x7   :  { %v918_v26 = vsel %vm369_vm5, %v370_v20, %v371_v21  ;;  %v928_v29 = vsel %vm164_vm2, %v880_v9, %v166_v12  ;;  %v237_v34 = vrot.slane %v859_v4, 5  ;;  %v239_v35 = vrot.slane %v864_v5, 5 }
   0x8   :  { %147 = vrot.lane.b32.xlu0 %v864_v5, %s794_s27  ;;  %745 = vmatmul.mubr.msk.f32.gmra.mxu0 %vm1288_vm0, %v864_v5  ;;  %v885_v10 = vld [vmem:[#allocation4 + $0x8] sm:$0x1]  ;;  %v921_v27 = vsel %vm369_vm5, %v373_v22, %v375_v23  ;;  %v924_v28 = vsel %vm369_vm5, %v371_v21, %v373_v22  ;;  %v204_v32 = vsel %vm199_vm4, %v201_v24, %v203_v17  ;;  %vm233_vm6 = vcmask 1042432   ;;  %v493_v17 = vld [vmem:[%s1285_s4 + $0x78] sm:$0xff]  ;;  %v486_v22 = vld [vmem:[%s1285_s4 + $0x40] sm:$0xff] }
   0x9   :  { %v887_v11 = vld [vmem:[#allocation4] sm:$0xff]  ;;  %v192_v14 = vrot.slane %v885_v10, 7  ;;  %v226_v31 = vrot.slane %v885_v10, 6  ;;  %v234_v36 = vrot.slane %v839_v1, 5  ;;  %v240_v37 = vsel %vm233_vm6, %v237_v34, %v239_v35  ;;  %631 = vmatpush1.msra.mxu0 %v493_v17  ;;  %765 = vmatpush1.msra.mxu1 %v493_v17  ;;  %v485_v23 = vld [vmem:[%s1285_s4 + $0x38] sm:$0xff] }
   0xa   :  { %427 = vst.msk [vmem:[#allocation4 - $0x7] sm:$0x80] %vm426_vm3, %v859_v4  ;;  %159 = vrot.lane.b32.xlu1 %v885_v10, %s795_s0  ;;  %v191_v13 = vrot.slane %v887_v11, 7  ;;  %v225_v30 = vrot.slane %v887_v11, 6  ;;  %v235_v38 = vrot.slane %v844_v2, 5  ;;  %v202_v39 = vsel %vm199_vm4, %v200_v19, %v201_v24  ;;  %632 = vmatprep.subr.mxu0 %v793_v3  ;;  %v487_v21 = vld [vmem:[%s1285_s4 + $0x48] sm:$0xff] }
   0xb   :  { %428 = vst.msk [vmem:[#allocation4 + $0x1] sm:$0xff] %vm1288_vm0, %v864_v5  ;;  %v259_v40 = vrot.slane %v887_v11, 5  ;;  %v260_v41 = vrot.slane %v885_v10, 5  ;;  %v271_v44 = vrot.slane %v859_v4, 4  ;;  %v273_v45 = vrot.slane %v864_v5, 4  ;;  %748 = vmatprep.subr.mxu1 %v793_v3  ;;  %v484_v24 = vld [vmem:[%s1285_s4 + $0x30] sm:$0xff] }
   0xc   :  { %172 = vrot.lane.b32.xlu0 %v880_v9, %s795_s0  ;;  %v193_v16 = vsel %vm164_vm2, %v191_v13, %v192_v14  ;;  %v227_v33 = vsel %vm199_vm4, %v225_v30, %v226_v31  ;;  %v238_v42 = vsel %vm233_vm6, %v235_v38, %v237_v34  ;;  %v268_v46 = vrot.slane %v839_v1, 4  ;;  %v478_v35 = vld [vmem:[%s1285_s4] sm:$0xff] }
   0xd   :  { %v261_v43 = vsel %vm233_vm6, %v259_v40, %v260_v41  ;;  %vm267_vm7 = vcmask 1043456   ;;  %v269_v48 = vrot.slane %v844_v2, 4  ;;  %v236_v49 = vsel %vm233_vm6, %v234_v36, %v235_v38 }
   0xe   :  { %176 = vrot.lane.b32.xlu1 %v900_v15, %s795_s0  ;;  %v274_v47 = vsel %vm267_vm7, %v271_v44, %v273_v45  ;;  %v293_v50 = vrot.slane %v887_v11, 4  ;;  %v294_v51 = vrot.slane %v885_v10, 4  ;;  %v305_v54 = vrot.slane %v859_v4, 3 }
   0xf   :  { %v272_v52 = vsel %vm267_vm7, %v269_v48, %v271_v44  ;;  %v307_v55 = vrot.slane %v864_v5, 3  ;;  %vm301_vm8 = vcmask 1044480   ;;  %v302_v56 = vrot.slane %v839_v1, 3 }
  0x10   :  { %143 = vrot.lane.b32.xlu0 %v844_v2, %s794_s27  ;;  %v295_v53 = vsel %vm267_vm7, %v293_v50, %v294_v51  ;;  %v303_v58 = vrot.slane %v844_v2, 3  ;;  %v270_v59 = vsel %vm267_vm7, %v268_v46, %v269_v48  ;;  %v327_v60 = vrot.slane %v887_v11, 3 }
  0x11   :  { %v308_v57 = vsel %vm301_vm8, %v305_v54, %v307_v55  ;;  %v328_v61 = vrot.slane %v885_v10, 3  ;;  %v339_v0 = vrot.slane %v859_v4, 2  ;;  %v341_v6 = vrot.slane %v864_v5, 2 }
  0x12   :  { %207 = vrot.lane.b32.xlu1 %v200_v19, %s796_s28  ;;  %v306_v62 = vsel %vm301_vm8, %v303_v58, %v305_v54  ;;  %v336_v7 = vrot.slane %v839_v1, 2  ;;  %vm335_vm9 = vcmask 1045504   ;;  %v337_v12 = vrot.slane %v844_v2, 2  ;;  %v24_v1 = vld [vmem:[%s1284_s1] sm:$0x1]  ;;  %v489_v19 = vld [vmem:[%s1285_s4 + $0x58] sm:$0xff] }
  0x13   :  { %v329_v63 = vsel %vm301_vm8, %v327_v60, %v328_v61  ;;  %v342_v8 = vsel %vm335_vm9, %v339_v0, %v341_v6  ;;  %v304_v13 = vsel %vm301_vm8, %v302_v56, %v303_v58  ;;  %v361_v14 = vrot.slane %v887_v11, 2 }
  0x14   :  { %194 = vrot.lane.b32.xlu0 %v193_v16, %s796_s28  ;;  %v362_v16 = vrot.slane %v885_v10, 2  ;;  %v340_v4 = vsel %vm335_vm9, %v337_v12, %v339_v0  ;;  %v338_v2 = vsel %vm335_vm9, %v336_v7, %v337_v12  ;;  %vm25_vm10 = vcmask 516096  }
  0x15   :  { %26 = vst.msk [vmem:[#allocation3] sm:$0x1] %vm25_vm10, %v24_v1  ;;  %vm411_vm11 = vcmask 122944   ;;  %vm1292_vm12 = vcmask 523264   ;;  %vm153_vm13 = vcmask 589312   ;;  %vm422_vm14 = vcmask 130113  }
  0x16   :  { %174 = vrot.lane.b32.xlu1 %v928_v29, %s795_s0  ;;  %v363_v5 = vsel %vm335_vm9, %v361_v14, %v362_v16  ;;  %vm186_vm15 = vcmask 654912   ;;  %vm1289_vm1 = vcmask 720512   ;;  %vm1290_vm2 = vcmask 786112  }
  0x17   :  { %vm162_vm3 = vcmask 647744   ;;  %vm184_vm4 = vcmask 654913   ;;  %vm289_vm6 = vcmask 851712   ;;  %vm197_vm7 = vcmask 714368  }
  0x18   :  { %213 = vrot.lane.b32.xlu0 %v206_v25, %s796_s28  ;;  %v483_v25 = vld [vmem:[%s1285_s4 + $0x28] sm:$0xff]  ;;  %vm219_vm8 = vcmask 720514   ;;  %vm1291_vm9 = vcmask 917312   ;;  %vm231_vm10 = vcmask 780992  }
  0x1a   :  { %228 = vrot.lane.b32.xlu1 %v227_v33, %s797_s29 }
  0x1c   :  { %211 = vrot.lane.b32.xlu0 %v204_v32, %s796_s28 }
  0x1e   :  { %247 = vrot.lane.b32.xlu1 %v240_v37, %s797_s29  ;;  %v494_v37 = vld [vmem:[%s1285_s4 + $0x80] sm:$0xff] }
  0x20   :  { %241 = vrot.lane.b32.xlu0 %v234_v36, %s797_s29  ;;  %v495_v36 = vld [vmem:[%s1285_s4 + $0x88] sm:$0xff] }
  0x22   :  { %245 = vrot.lane.b32.xlu1 %v238_v42, %s797_s29 }
  0x24   :  { %209 = vrot.lane.b32.xlu0 %v202_v39, %s796_s28 }
  0x26   :  { %275 = vrot.lane.b32.xlu1 %v268_v46, %s798_s30 }
  0x28   :  { %262 = vrot.lane.b32.xlu0 %v261_v43, %s798_s30 }
  0x2a   :  { %243 = vrot.lane.b32.xlu1 %v236_v49, %s797_s29 }
  0x2c   :  { %281 = vrot.lane.b32.xlu0 %v274_v47, %s798_s30 }
  0x2e   :  { %296 = vrot.lane.b32.xlu1 %v295_v53, %s799_s6 }
  0x30   :  { %279 = vrot.lane.b32.xlu0 %v272_v52, %s798_s30 }
  0x32   :  { %315 = vrot.lane.b32.xlu1 %v308_v57, %s799_s6 }
  0x34   :  { %309 = vrot.lane.b32.xlu0 %v302_v56, %s799_s6 }
  0x36   :  { %313 = vrot.lane.b32.xlu1 %v306_v62, %s799_s6 }
  0x38   :  { %277 = vrot.lane.b32.xlu0 %v270_v59, %s798_s30 }
  0x3a   :  { %343 = vrot.lane.b32.xlu1 %v336_v7, %s800_s7 }
  0x3c   :  { %330 = vrot.lane.b32.xlu0 %v329_v63, %s800_s7 }
  0x3e   :  { %311 = vrot.lane.b32.xlu1 %v304_v13, %s799_s6 }
  0x40   :  { %349 = vrot.lane.b32.xlu0 %v342_v8, %s800_s7 }
  0x42   :  { %364 = vrot.lane.b32.xlu1 %v363_v5, %s801_s8 }
  0x44   :  { %347 = vrot.lane.b32.xlu0 %v340_v4, %s800_s7 }
  0x46   :  { %383 = vrot.lane.b32.xlu1 %v921_v27, %s801_s8  ;;  %v395_v27 = vrot.slane %v887_v11, 1 }
  0x48   :  { %377 = vrot.lane.b32.xlu0 %v370_v20, %s801_s8  ;;  %v488_v20 = vld [vmem:[%s1285_s4 + $0x50] sm:$0xff] }
  0x4a   :  { %381 = vrot.lane.b32.xlu1 %v924_v28, %s801_s8  ;;  %v396_v28 = vrot.slane %v885_v10, 1 }
  0x4c   :  { %345 = vrot.lane.b32.xlu0 %v338_v2, %s800_s7  ;;  %v397_v31 = vsel %vm369_vm5, %v395_v27, %v396_v28  ;;  %vm409_vm5 = vcmask 130112  }
  0x4d   :  { %399 = vst.msk [vmem:[#allocation2 + $0x8] sm:$0xff] %vm1288_vm0, %v397_v31  ;;  %vm287_vm0 = vcmask 851716  }
  0x4e   :  { %405 = vrot.lane.b32.xlu1 %v885_v10, %s802_s9  ;;  %v480_v10 = vld [vmem:[%s1285_s4 + $0x10] sm:$0xff] }
  0x50   :  { %379 = vrot.lane.b32.xlu0 %v918_v26, %s801_s8  ;;  %v482_v26 = vld [vmem:[%s1285_s4 + $0x20] sm:$0xff] }
  0x52   :  { %415 = vrot.lane.b32.xlu1 %v928_v29, %s802_s9  ;;  %v481_v29 = vld [vmem:[%s1285_s4 + $0x18] sm:$0xff] }
  0x54   :  { %413 = vrot.lane.b32.xlu0 %v880_v9, %s802_s9  ;;  %v492_v9 = vld [vmem:[%s1285_s4 + $0x70] sm:$0xff] }
  0x55   :  { %633 = vmatpush1.msra.mxu0 %v492_v9  ;;  %766 = vmatpush1.msra.mxu1 %v492_v9 }
  0x56   :  { %417 = vrot.lane.b32.xlu1 %v900_v15, %s802_s9  ;;  %634 = vmatprep.subr.mxu0 %v793_v3  ;;  %v491_v15 = vld [vmem:[%s1285_s4 + $0x68] sm:$0xff] }
  0x57   :  { %749 = vmatprep.subr.mxu1 %v793_v3  ;;  %635 = vmatpush1.msra.mxu0 %v491_v15 }
  0x58   :  { %403 = vrot.lane.b32.xlu0 %v887_v11, %s802_s9  ;;  %767 = vmatpush1.msra.mxu1 %v491_v15  ;;  %v479_v11 = vld [vmem:[%s1285_s4 + $0x8] sm:$0xff] }
  0x59   :  { %636 = vmatprep.subr.mxu0 %v793_v3  ;;  %750 = vmatprep.subr.mxu1 %v793_v3 }
  0x5a   :  { %637 = vmatpush1.msra.mxu0 %v490_v18  ;;  %768 = vmatpush1.msra.mxu1 %v490_v18 }
  0x5b   :  { %638 = vmatprep.subr.mxu0 %v793_v3  ;;  %751 = vmatprep.subr.mxu1 %v793_v3 }
  0x5c   :  { %639 = vmatpush1.msra.mxu0 %v489_v19  ;;  %769 = vmatpush1.msra.mxu1 %v489_v19  ;;  %v433_v19 = vlaneseq }
  0x5d   :  { %640 = vmatprep.subr.mxu0 %v793_v3  ;;  %752 = vmatprep.subr.mxu1 %v793_v3 }
  0x5e   :  { %641 = vmatpush1.msra.mxu0 %v488_v20  ;;  %770 = vmatpush1.msra.mxu1 %v488_v20 }
  0x5f   :  { %642 = vmatprep.subr.mxu0 %v793_v3  ;;  %753 = vmatprep.subr.mxu1 %v793_v3 }
  0x60   :  { %643 = vmatpush1.msra.mxu0 %v487_v21  ;;  %771 = vmatpush1.msra.mxu1 %v487_v21 }
  0x61   :  { %644 = vmatprep.subr.mxu0 %v793_v3  ;;  %754 = vmatprep.subr.mxu1 %v793_v3 }
  0x62   :  { %645 = vmatpush1.msra.mxu0 %v486_v22  ;;  %772 = vmatpush1.msra.mxu1 %v486_v22  ;;  %v1207_v22 = vshrl.u32 %v433_v19, 7 }
  0x63   :  { %646 = vmatprep.subr.mxu0 %v793_v3  ;;  %755 = vmatprep.subr.mxu1 %v793_v3 }
  0x64   :  { %647 = vmatpush1.msra.mxu0 %v485_v23  ;;  %773 = vmatpush1.msra.mxu1 %v485_v23 }
  0x65   :  { %648 = vmatprep.subr.mxu0 %v793_v3  ;;  %756 = vmatprep.subr.mxu1 %v793_v3 }
  0x66   :  { %649 = vmatpush1.msra.mxu0 %v484_v24  ;;  %774 = vmatpush1.msra.mxu1 %v484_v24  ;;  %v460_v24 = vsub.s32 0, %v1207_v22 }
  0x67   :  { %650 = vmatprep.subr.mxu0 %v793_v3  ;;  %757 = vmatprep.subr.mxu1 %v793_v3 }
  0x68   :  { %651 = vmatpush1.msra.mxu0 %v483_v25  ;;  %775 = vmatpush1.msra.mxu1 %v483_v25  ;;  %v1233_v25 = vld [vmem:[%s1286_s2] sm:$0xff] }
  0x69   :  { %652 = vmatprep.subr.mxu0 %v793_v3  ;;  %758 = vmatprep.subr.mxu1 %v793_v3  ;;  %v461_v28 = vrot.slane %v1233_v25, %v460_v24  ;;  %v729_v24 = vld [vmem:[#allocation3] ss:$0 sm:$0xff] }
  0x6a   :  { %653 = vmatpush1.msra.mxu0 %v482_v26  ;;  %776 = vmatpush1.msra.mxu1 %v482_v26 }
  0x6b   :  { %654 = vmatprep.subr.mxu0 %v793_v3  ;;  %759 = vmatprep.subr.mxu1 %v793_v3 }
  0x6c   :  { %655 = vmatpush1.msra.mxu0 %v481_v29  ;;  %777 = vmatpush1.msra.mxu1 %v481_v29 }
  0x6d   :  { %656 = vmatprep.subr.mxu0 %v793_v3  ;;  %760 = vmatprep.subr.mxu1 %v793_v3 }
  0x6e   :  { %657 = vmatpush1.msra.mxu0 %v480_v10  ;;  %778 = vmatpush1.msra.mxu1 %v480_v10 }
  0x6f   :  { %658 = vmatprep.subr.mxu0 %v793_v3  ;;  %761 = vmatprep.subr.mxu1 %v793_v3 }
  0x70   :  { %659 = vmatpush1.msra.mxu0 %v479_v11  ;;  %779 = vmatpush1.msra.mxu1 %v479_v11 }
  0x71   :  { %660 = vmatprep.subr.mxu0 %v793_v3  ;;  %762 = vmatprep.subr.mxu1 %v793_v3 }
  0x72   :  { %661 = vmatpush1.msra.mxu0 %v478_v35  ;;  %780 = vmatpush1.msra.mxu1 %v478_v35 }
  0x73   :  { %690 = vmatprep.subr.mxu0 %v793_v3  ;;  %763 = vmatprep.subr.mxu1 %v793_v3 }
  0x74   :  { %v1058_v32 = vpop.permute.xlu1 %145  ;;  %691 = vmatpush2.msra.mxu0 %v495_v36  ;;  %781 = vmatpush2.msra.mxu1 %v495_v36  ;;  %v464_v36 = vsub.s32 1, %v1207_v22 }
  0x75   :  { %692 = vmatprep.subr.mxu0 %v793_v3  ;;  %764 = vmatprep.subr.mxu1 %v793_v3 }
  0x76   :  { %v1055_v30 = vpop.permute.xlu0 %141  ;;  %693 = vmatpush2.msra.mxu0 %v494_v37  ;;  %782 = vmatpush2.msra.mxu1 %v494_v37 }
  0x78   :  { %v1073_v34 = vpop.permute.xlu1 %178 }
  0x7a   :  { %v1071_v33 = vpop.permute.xlu0 %147 }
  0x7c   :  { %v1090_v39 = vpop.permute.xlu1 %159 }
  0x7e   :  { %v1088_v38 = vpop.permute.xlu0 %172 }
  0x80   :  { %v1094_v41 = vpop.permute.xlu1 %176 }
  0x82   :  { %v144_v40 = vpop.permute.xlu0 %143 }
  0x84   :  { %v1098_v43 = vpop.permute.xlu1 %207 }
  0x86   :  { %v1096_v42 = vpop.permute.xlu0 %194 }
  0x88   :  { %v175_v45 = vpop.permute.xlu1 %174 }
  0x8a   :  { %v1100_v44 = vpop.permute.xlu0 %213 }
  0x8c   :  { %v1104_v47 = vpop.permute.xlu1 %228 }
  0x8e   :  { %v1102_v46 = vpop.permute.xlu0 %211 }
  0x90   :  { %v1108_v49 = vpop.permute.xlu1 %247 }
  0x92   :  { %v1106_v48 = vpop.permute.xlu0 %241 }
  0x94   :  { %v1110_v50 = vpop.permute.xlu1 %245 }
  0x96   :  { %v210_v3 = vpop.permute.xlu0 %209 }
  0x98   :  { %v1114_v52 = vpop.permute.xlu1 %275 }
  0x9a   :  { %v1112_v51 = vpop.permute.xlu0 %262 }
  0x9c   :  { %v244_v54 = vpop.permute.xlu1 %243 }
  0x9e   :  { %v1116_v53 = vpop.permute.xlu0 %281 }
  0xa0   :  { %v1120_v56 = vpop.permute.xlu1 %296 }
  0xa2   :  { %v1118_v55 = vpop.permute.xlu0 %279 }
  0xa4   :  { %v1124_v58 = vpop.permute.xlu1 %315 }
  0xa6   :  { %v1122_v57 = vpop.permute.xlu0 %309 }
  0xa8   :  { %v1126_v60 = vpop.permute.xlu1 %313 }
  0xaa   :  { %v278_v59 = vpop.permute.xlu0 %277 }
  0xac   :  { %v1130_v62 = vpop.permute.xlu1 %343 }
  0xae   :  { %v1128_v61 = vpop.permute.xlu0 %330 }
  0xb0   :  { %v312_v0 = vpop.permute.xlu1 %311 }
  0xb2   :  { %v1132_v63 = vpop.permute.xlu0 %349 }
  0xb4   :  { %v1136_v7 = vpop.permute.xlu1 %364 }
  0xb6   :  { %v1134_v6 = vpop.permute.xlu0 %347 }
  0xb8   :  { %v1140_v12 = vpop.permute.xlu1 %383 }
  0xba   :  { %v1138_v8 = vpop.permute.xlu0 %377 }
  0xbc   :  { %v1144_v14 = vpop.permute.xlu1 %381 }
  0xbe   :  { %v1142_v13 = vpop.permute.xlu0 %345 }
  0xc0   :  { %v406_v4 = vpop.permute.xlu1 %405 }
  0xc1   :  { %412 = vst.msk [vmem:[#allocation2 + $0x18] sm:$0x1] %vm411_vm11, %v406_v4  ;;  %vm253_vm11 = vcmask 786115  }
  0xc2   :  { %v1146_v16 = vpop.permute.xlu0 %379 }
  0xc4   :  { %v743_v5 = vpop.f32.mrf.mxu0  ;;  %v416_v17 = vpop.permute.xlu1 %415 }
  0xc5   :  { %136 = vst.msk [vmem:[#allocation2 + $0x10] sm:$0xff] %vm1292_vm12, %v743_v5 }
  0xc6   :  { %v414_v2 = vpop.permute.xlu0 %413  ;;  %155 = vst.msk [vmem:[#allocation2 + $0x10] sm:$0xff] %vm153_vm13, %v144_v40  ;;  %v115_v1 = vpop.f32.mrf.mxu0 }
  0xc7   :  { %423 = vst.msk [vmem:[#allocation2 + $0x18] sm:$0xfe] %vm422_vm14, %v414_v2  ;;  %vm265_vm14 = vcmask 847616  }
  0xc8   :  { %187 = vst.msk [vmem:[#allocation2 + $0x10] sm:$0xff] %vm186_vm15, %v175_v45  ;;  %v746_v9 = vpop.f32.mrf.mxu0  ;;  %v418_v20 = vpop.permute.xlu1 %417  ;;  %v465_v45 = vrot.slane %v1233_v25, %v464_v36 }
  0xc9   :  { %135 = vst.msk [vmem:[#allocation2] sm:$0xff] %vm1292_vm12, %v115_v1  ;;  %138 = vst.msk [vmem:[#allocation2 + $0x30] sm:$0xff] %vm1292_vm12, %v746_v9 }
  0xca   :  { %424 = vst.msk [vmem:[#allocation2 + $0x28] sm:$0xff] %vm409_vm5, %v416_v17  ;;  %v404_v15 = vpop.permute.xlu0 %403  ;;  %v125_v18 = vpop.f32.mrf.mxu0  ;;  %425 = vst.msk [vmem:[#allocation2 + $0x38] sm:$0xff] %vm409_vm5, %v418_v20 }
  0xcb   :  { %222 = vst.msk [vmem:[#allocation2 + $0x10] sm:$0xff] %vm1289_vm1, %v210_v3  ;;  %vm357_vm1 = vcmask 982912  }
  0xcc   :  { %154 = vst.msk [vmem:[#allocation2] sm:$0xff] %vm153_vm13, %v1055_v30  ;;  %157 = vst.msk [vmem:[#allocation2 + $0x30] sm:$0xff] %vm153_vm13, %v1071_v33 }
  0xcd   :  { %256 = vst.msk [vmem:[#allocation2 + $0x10] sm:$0xff] %vm1290_vm2, %v244_v54  ;;  %vm321_vm2 = vcmask 917317  }
  0xce   :  { %163 = vst.msk [vmem:[#allocation2] sm:$0x1] %vm162_vm3, %v1090_v39  ;;  %vm299_vm3 = vcmask 914240   ;;  %v612_v21 = vld [vmem:[#allocation2 + $0x18] sm:$0xff] }
  0xcf   :  { %185 = vst.msk [vmem:[#allocation2] sm:$0xfe] %vm184_vm4, %v1088_v38  ;;  %vm391_vm4 = vcmask 1048512  }
  0xd0   :  { %290 = vst.msk [vmem:[#allocation2 + $0x10] sm:$0xff] %vm289_vm6, %v278_v59 }
  0xd1   :  { %198 = vst.msk [vmem:[#allocation2] sm:$0x3] %vm197_vm7, %v1096_v42  ;;  %vm333_vm7 = vcmask 980864  }
  0xd2   :  { %220 = vst.msk [vmem:[#allocation2] sm:$0xfc] %vm219_vm8, %v1098_v43  ;;  %vm355_vm8 = vcmask 982918  }
  0xd3   :  { %410 = vst.msk [vmem:[#allocation2 + $0x8] sm:$0xff] %vm409_vm5, %v404_v15  ;;  %vm508_vm5 = vcmp.lt.s32.totalorder %v1207_v22, 1 }
  0xd4   :  { %324 = vst.msk [vmem:[#allocation2 + $0x10] sm:$0xff] %vm1291_vm9, %v312_v0  ;;  %vm389_vm9 = vcmask 1048519  }
  0xd5   :  { %232 = vst.msk [vmem:[#allocation2] sm:$0x7] %vm231_vm10, %v1104_v47  ;;  %vm1293_vm10 = vcmask 720512  }
  0xd6   :  { %254 = vst.msk [vmem:[#allocation2] sm:$0xf8] %vm253_vm11, %v1106_v48  ;;  %vm367_vm11 = vcmask 1047488  }
  0xd7   :  { %189 = vst.msk [vmem:[#allocation2 + $0x30] sm:$0xff] %vm186_vm15, %v1073_v34 }
  0xd8   :  { %137 = vst.msk [vmem:[#allocation2 + $0x20] sm:$0xff] %vm1292_vm12, %v125_v18  ;;  %vm1294_vm12 = vcmask 786112  }
  0xd9   :  { %266 = vst.msk [vmem:[#allocation2] sm:$0xf] %vm265_vm14, %v1112_v51  ;;  %v468_v51 = vsub.s32 3, %v1207_v22  ;;  %vm550_vm14 = vcmp.lt.s32.totalorder %v1207_v22, 4 }
  0xda   :  { %288 = vst.msk [vmem:[#allocation2] sm:$0xf0] %vm287_vm0, %v1114_v52  ;;  %vm617_vm0 = vcmask 130048   ;;  %v610_v23 = vld [vmem:[#allocation2 + $0x8] sm:$0xff] }
  0xdb   :  { %224 = vst.msk [vmem:[#allocation2 + $0x30] sm:$0xff] %vm1293_vm10, %v1100_v44  ;;  %731 = vmatprep.mubr.msk.f32.mxu1 %vm617_vm0, %v612_v21  ;;  %730 = vmatprep.mubr.msk.f32.mxu0 %vm617_vm0, %v610_v23 }
  0xdc   :  { %358 = vst.msk [vmem:[#allocation2 + $0x10] sm:$0xff] %vm357_vm1, %v1142_v13 }
  0xdd   :  { %156 = vst.msk [vmem:[#allocation2 + $0x20] sm:$0xff] %vm153_vm13, %v1058_v32  ;;  %vm1296_vm13 = vcmask 917312  }
  0xde   :  { %258 = vst.msk [vmem:[#allocation2 + $0x30] sm:$0xff] %vm1294_vm12, %v1108_v49  ;;  %vm1295_vm12 = vmmov %vm1293_vm10 }
  0xdf   :  { %300 = vst.msk [vmem:[#allocation2] sm:$0x1f] %vm299_vm3, %v1120_v56  ;;  %vm446_vm3 = vcmp.ge.s32.totalorder %v1207_v22, 4 }
  0xe0   :  { %322 = vst.msk [vmem:[#allocation2] sm:$0xe0] %vm321_vm2, %v1122_v57  ;;  %vm1298_vm2 = vmmov %vm1296_vm13 }
  0xe1   :  { %188 = vst.msk [vmem:[#allocation2 + $0x20] sm:$0xff] %vm186_vm15, %v1094_v41  ;;  %vm1297_vm15 = vcmask 786112  }
  0xe2   :  { %392 = vst.msk [vmem:[#allocation2 + $0x10] sm:$0xff] %vm391_vm4, %v1146_v16 }
  0xe3   :  { %292 = vst.msk [vmem:[#allocation2 + $0x30] sm:$0xff] %vm289_vm6, %v1116_v53 }
  0xe4   :  { %334 = vst.msk [vmem:[#allocation2] sm:$0x3f] %vm333_vm7, %v1128_v61  ;;  %vm719_vm7 = vcmask 523271  }
  0xe5   :  { %356 = vst.msk [vmem:[#allocation2] sm:$0xc0] %vm355_vm8, %v1130_v62 }
  0xe6   :  { %223 = vst.msk [vmem:[#allocation2 + $0x20] sm:$0xff] %vm1295_vm12, %v1102_v46  ;;  %vm1303_vm12 = vcmask 64512  }
  0xe7   :  { %326 = vst.msk [vmem:[#allocation2 + $0x30] sm:$0xff] %vm1296_vm13, %v1124_v58  ;;  %vm1304_vm13 = vmmov %vm1303_vm12 }
  0xe8   :  { %368 = vst.msk [vmem:[#allocation2] sm:$0x7f] %vm367_vm11, %v1136_v7  ;;  %v469_v7 = vrot.slane %v1233_v25, %v468_v51 }
  0xe9   :  { %390 = vst.msk [vmem:[#allocation2] sm:$0x80] %vm389_vm9, %v1138_v8  ;;  %v501_v26 = vld [vmem:[#allocation2 + $0x10] sm:$0xff]  ;;  %vm442_vm9 = vcmp.ge.s32.totalorder %v1207_v22, 2 }
  0xea   :  { %257 = vst.msk [vmem:[#allocation2 + $0x20] sm:$0xff] %vm1297_vm15, %v1110_v50  ;;  %v505_v27 = vrot.slane %v501_v26, 7  ;;  %vm1305_vm15 = vmmov %vm1303_vm12 }
  0xeb   :  { %360 = vst.msk [vmem:[#allocation2 + $0x30] sm:$0xff] %vm357_vm1, %v1132_v63 }
  0xec   :  { %291 = vst.msk [vmem:[#allocation2 + $0x20] sm:$0xff] %vm289_vm6, %v1118_v55  ;;  %vm529_vm6 = vcmp.lt.s32.totalorder %v1207_v22, 2 }
  0xed   :  { %325 = vst.msk [vmem:[#allocation2 + $0x20] sm:$0xff] %vm1298_vm2, %v1126_v60  ;;  %v472_v60 = vsub.s32 7, %v1207_v22 }
  0xee   :  { %394 = vst.msk [vmem:[#allocation2 + $0x30] sm:$0xff] %vm391_vm4, %v1140_v12 }
  0xef   :  { %359 = vst.msk [vmem:[#allocation2 + $0x20] sm:$0xff] %vm357_vm1, %v1134_v6  ;;  %vm438_vm1 = vcmp.ge.s32.totalorder %v1207_v22, 1  ;;  %v430_v6 = vld [vmem:[%s1286_s2 + $0x8] sm:$0xff]  ;;  %v473_v16 = vrot.slane %v1233_v25, %v472_v60  ;;  %v431_v22 = vld [vmem:[%s1286_s2 + $0x10] sm:$0xff] }
  0xf0   :  { %393 = vst.msk [vmem:[#allocation2 + $0x20] sm:$0xff] %vm391_vm4, %v1144_v14  ;;  %v500_v29 = vld [vmem:[#allocation2] sm:$0xff]  ;;  %v477_v5 = vrot.slane %v430_v6, %v472_v60  ;;  %vm1299_vm4 = vcmask 523264  }
  0xf1   :  { %v504_v30 = vrot.slane %v500_v29, 7  ;;  %v571_v20 = vmul.f32 0.0, %v473_v16  ;;  %vm1300_vm8 = vmmov %vm1299_vm4 }
  0xf2   :  { %vm1301_vm10 = vmmov %vm1299_vm4 }
  0xf3   :  { %v511_v10 = vsel %vm508_vm5, %v504_v30, %v505_v27  ;;  %vm1302_vm11 = vmmov %vm1299_vm4 }
  0xf4   :  { %v518_v33 = vmul.f32 %v511_v10, %v461_v28  ;;  %v597_v10 = vmul.f32 %v729_v24, %v1233_v25 }
  0xf5   :  { %v503_v31 = vld [vmem:[#allocation2 + $0x30] sm:$0xff] }
  0xf6   :  { %v507_v32 = vrot.slane %v503_v31, 7  ;;  %v522_v41 = vadd.f32 %v518_v33, %v501_v26 }
  0xf7   :  { %v502_v11 = vld [vmem:[#allocation2 + $0x20] sm:$0xff] }
  0xf8   :  { %v506_v34 = vrot.slane %v502_v11, 7  ;;  %v512_v35 = vsel %vm508_vm5, %v507_v32, %v504_v30  ;;  %v526_v49 = vrot.slane %v522_v41, 6 }
  0xf9   :  { %v513_v37 = vsel %vm438_vm1, %v512_v35, 0.0 }
  0xfa   :  { %v509_v38 = vsel %vm508_vm5, %v506_v34, %v507_v32  ;;  %v510_v39 = vsel %vm508_vm5, %v505_v27, %v506_v34  ;;  %v517_v40 = vmul.f32 %v513_v37, %v461_v28  ;;  %v432_v32 = vld [vmem:[%s1286_s2 + $0x18] sm:$0xff]  ;;  %v598_v34 = vmul.f32 %v729_v24, %v430_v6 }
  0xfb   :  { %v519_v42 = vmul.f32 %v510_v39, %v461_v28  ;;  %v520_v43 = vmul.f32 %v509_v38, %v461_v28  ;;  %v583_v28 = vmul.f32 0.0, %v477_v5  ;;  %v599_v37 = vmul.f32 %v729_v24, %v431_v22 }
  0xfc   :  { %v521_v44 = vadd.f32 %v517_v40, %v500_v29 }
  0xfd   :  { %v523_v46 = vadd.f32 %v519_v42, %v502_v11  ;;  %v524_v47 = vadd.f32 %v520_v43, %v503_v31 }
  0xfe   :  { %v525_v48 = vrot.slane %v521_v44, 6 }
  0xff   :  { %v527_v3 = vrot.slane %v523_v46, 6  ;;  %v528_v50 = vrot.slane %v524_v47, 6 }
 0x100   :  { %v532_v52 = vsel %vm529_vm6, %v525_v48, %v526_v49 }
 0x101   :  { %v530_v53 = vsel %vm529_vm6, %v527_v3, %v528_v50  ;;  %v531_v54 = vsel %vm529_vm6, %v526_v49, %v527_v3  ;;  %v533_v55 = vsel %vm529_vm6, %v528_v50, %v525_v48  ;;  %v539_v56 = vmul.f32 %v532_v52, %v465_v45  ;;  %v614_v50 = vld [vmem:[#allocation2 + $0x28] sm:$0xff]  ;;  %v616_v52 = vld [vmem:[#allocation2 + $0x38] sm:$0xff] }
 0x102   :  { %v534_v57 = vsel %vm442_vm9, %v533_v55, 0.0  ;;  %v540_v58 = vmul.f32 %v531_v54, %v465_v45  ;;  %v541_v59 = vmul.f32 %v530_v53, %v465_v45 }
 0x103   :  { %v538_v61 = vmul.f32 %v534_v57, %v465_v45  ;;  %v543_v62 = vadd.f32 %v539_v56, %v522_v41  ;;  %v600_v41 = vmul.f32 %v729_v24, %v432_v32 }
 0x104   :  { %v544_v63 = vadd.f32 %v540_v58, %v523_v46  ;;  %v545_v0 = vadd.f32 %v541_v59, %v524_v47 }
 0x105   :  { %v542_v8 = vadd.f32 %v538_v61, %v521_v44  ;;  %v547_v12 = vrot.slane %v543_v62, 4 }
 0x106   :  { %v548_v13 = vrot.slane %v544_v63, 4  ;;  %v549_v14 = vrot.slane %v545_v0, 4 }
 0x107   :  { %v546_v4 = vrot.slane %v542_v8, 4 }
 0x108   :  { %v552_v2 = vsel %vm550_vm14, %v547_v12, %v548_v13  ;;  %v551_v1 = vsel %vm550_vm14, %v548_v13, %v549_v14 }
 0x109   :  { %v553_v17 = vsel %vm550_vm14, %v546_v4, %v547_v12  ;;  %v554_v9 = vsel %vm550_vm14, %v549_v14, %v546_v4  ;;  %v561_v15 = vmul.f32 %v552_v2, %v469_v7  ;;  %v562_v26 = vmul.f32 %v551_v1, %v469_v7 }
 0x10a   :  { %v555_v18 = vsel %vm446_vm3, %v554_v9, 0.0  ;;  %v560_v19 = vmul.f32 %v553_v17, %v469_v7 }
 0x10b   :  { %v559_v21 = vmul.f32 %v555_v18, %v469_v7  ;;  %v565_v23 = vadd.f32 %v561_v15, %v544_v63  ;;  %v566_v35 = vadd.f32 %v562_v26, %v545_v0 }
 0x10c   :  { %v564_v27 = vadd.f32 %v560_v19, %v543_v62 }
 0x10d   :  { %v563_v29 = vadd.f32 %v559_v21, %v542_v8  ;;  %v574_v31 = vmul.f32 %v565_v23, %v473_v16 }
 0x10e   :  { %v573_v30 = vmul.f32 %v564_v27, %v473_v16 }
 0x10f   :  { %v572_v11 = vmul.f32 %v563_v29, %v473_v16  ;;  %v575_v33 = vadd.f32 %v571_v20, %v563_v29  ;;  %v578_v42 = vadd.f32 %v574_v31, %v566_v35 }
 0x110   :  { %v577_v36 = vadd.f32 %v573_v30, %v565_v23 }
 0x111   :  { %v576_v38 = vadd.f32 %v572_v11, %v564_v27  ;;  %v585_v39 = vmul.f32 %v575_v33, %v477_v5  ;;  %v587_v40 = vadd.f32 %v583_v28, %v575_v33 }
 0x113   :  { %v586_v43 = vmul.f32 %v576_v38, %v477_v5  ;;  %v588_v44 = vadd.f32 %v583_v28, %v576_v38  ;;  %v589_v45 = vadd.f32 %v585_v39, %v577_v36  ;;  %v601_v46 = vadd.f32 %v597_v10, %v587_v40 }
 0x115   :  { %v590_v47 = vadd.f32 %v586_v43, %v578_v42  ;;  %v602_v48 = vadd.f32 %v598_v34, %v588_v44  ;;  %v603_v49 = vadd.f32 %v599_v37, %v589_v45  ;;  %605 = vst.msk [vmem:[#allocation2] sm:$0xff] %vm1299_vm4, %v601_v46 }
 0x117   :  { %v604_v25 = vadd.f32 %v600_v41, %v590_v47  ;;  %606 = vst.msk [vmem:[#allocation2 + $0x10] sm:$0xff] %vm1300_vm8, %v602_v48 }
 0x118   :  { %607 = vst.msk [vmem:[#allocation2 + $0x20] sm:$0xff] %vm1301_vm10, %v603_v49 }
 0x119   :  { %608 = vst.msk [vmem:[#allocation2 + $0x30] sm:$0xff] %vm1302_vm11, %v604_v25 }
 0x11a   :  { %720 = vst.msk [vmem:[#allocation3 - $0x7] sm:$0x80] %vm719_vm7, %v604_v25 }
 0x11c   :  { %v609_v3 = vld [vmem:[#allocation2] sm:$0xff] }
 0x11d   :  { %695 = vmatmul.mubr.f32.vlgmr.msra.gmra.mxu0 %v609_v3 }
 0x11e   :  { %v611_v51 = vld [vmem:[#allocation2 + $0x10] sm:$0xff] }
 0x11f   :  { %700 = vmatmul.mubr.f32.vlgmr.msra.gmra.mxu1 %v611_v51  ;;  %v613_v53 = vld [vmem:[#allocation2 + $0x20] sm:$0xff] }
 0x120   :  { %732 = vmatprep.mubr.msk.f32.mxu1 %vm617_vm0, %v614_v50  ;;  %v615_v54 = vld [vmem:[#allocation2 + $0x30] sm:$0xff] }
 0x123   :  { %705 = vmatmul.mubr.f32.gmra.mxu1 %v613_v53 }
 0x124   :  { %733 = vmatprep.mubr.msk.f32.mxu1 %vm617_vm0, %v616_v52  ;;  %vm1306_vm0 = vmmov %vm1303_vm12 }
 0x127   :  { %710 = vmatmul.mubr.f32.gmra.mxu1 %v615_v54 }
 0x1dd   :  { %v696_v55 = vpop.f32.mrf.mxu0 }
 0x1de   :  { %715 = vst.msk [vmem:[%s1287_s5] sm:$0xff] %vm1303_vm12, %v696_v55 }
 0x1df   :  { %v698_v56 = vpop.f32.mrf.mxu0  ;;  %v701_v57 = vpop.f32.mrf.mxu1 }
 0x1e0   :  { %716 = vst.msk [vmem:[%s1287_s5 + $0x8] sm:$0xff] %vm1304_vm13, %v701_v57 }
 0x1e1   :  { %v703_v58 = vpop.f32.mrf.mxu1 }
 0x1e3   :  { %v706_v59 = vpop.f32.mrf.mxu1 }
 0x1e4   :  { %717 = vst.msk [vmem:[%s1287_s5 + $0x10] sm:$0xff] %vm1305_vm15, %v706_v59 }
 0x1e5   :  { %v708_v60 = vpop.f32.mrf.mxu1 }
 0x1e7   :  { %v711_v61 = vpop.f32.mrf.mxu1 }
 0x1e8   :  { %718 = vst.msk [vmem:[%s1287_s5 + $0x18] sm:$0xff] %vm1306_vm0, %v711_v61 }
 0x1e9   :  { %v713_v62 = vpop.f32.mrf.mxu1 }

</bundles_post_ra>
